<compile_context>
chip_gen: v7x
topology: tpu7x:2x2x1
jax: 0.10.0
libtpu: 0.0.40
codegen_flags: <defaults>
</compile_context>

<pallas_src>
import jax
import jax.numpy as jnp
import numpy as np
from jax.experimental import pallas as pl
from jax.experimental.pallas import tpu as pltpu

# ---- row layout of the single parameter slab (197, 128) -------------------------
_R_W3 = 0      # rows   0:128  W3 stacked (128,128): rows 0:64 = W3[:,:,0], 64:128 = W3[:,:,1]
_R_W2 = 128    # rows 128:192  W2 stacked (64,64) in lanes 0:64
_R_B3 = 192    # row 192       bias3 (128)
_R_B2 = 193    # row 193       bias2 in lanes 0:64
_R_W1H = 194   # row 194       conv1 tap-0 weights (x[t+1]) in lanes 0:32
_R_W1L = 195   # row 195       conv1 tap-1 weights (x[t])   in lanes 0:32
_R_B1 = 196    # row 196       bias1 in lanes 0:32
_SLAB_ROWS = 197


def _make_kernel(B, P1, P2, P3):
    T2, T3 = 4 * P2, 4 * P3
    M2 = B * P1 - 1          # conv2 candidate rows (per-batch seam rows are discarded)
    M3 = B * P2 - 1          # conv3 candidate rows

    def kernel(xs_ref, w_ref, out_ref, a2_scr, y2_scr, a3_scr, y3_scr, p3_scr):
        # ---- unpack the parameter slab (each slice read once) -------------------
        W3s = w_ref[_R_W3:_R_W3 + 128, :]            # (128, 128)
        W2s = w_ref[_R_W2:_R_W2 + 64, 0:64]          # (64, 64)
        b3 = w_ref[_R_B3:_R_B3 + 1, :]               # (1, 128)
        b2 = w_ref[_R_B2:_R_B2 + 1, 0:64]            # (1, 64)
        w1h = w_ref[_R_W1H:_R_W1H + 1, 0:32]         # (1, 32)
        w1l = w_ref[_R_W1L:_R_W1L + 1, 0:32]         # (1, 32)
        b1 = w_ref[_R_B1:_R_B1 + 1, 0:32]            # (1, 32)

        # ---- stage 1: ConvTranspose1d(1->32) + ReLU fused with MaxPool(4) -------
        # xs_ref[b*P1 + i, j] == x[b, 4*i + j], j = 0..4  (pre-sliced in the wrapper)
        # pooled[o] = relu( max_j ( x[4i+j+1]*w1h[o] + x[4i+j]*w1l[o] ) + b1[o] )
        s = [xs_ref[:, j:j + 1] for j in range(5)]   # (B*P1, 1) each
        z = s[1] * w1h + s[0] * w1l
        for j in range(1, 4):
            z = jnp.maximum(z, s[j + 1] * w1h + s[j] * w1l)
        p1 = jnp.maximum(z + b1, 0.0)                # (B*P1, 32)

        # ---- build tap-fused conv2 input: a2_scr[q] = [ p1[q] | p1[q-1] ] -------
        a2_scr[0:B * P1, 0:32] = p1
        a2_scr[1:B * P1 + 1, 32:64] = p1

        # ---- conv2 (32->64): ONE matmul, M=B*P1-1, K=64, N=64 --------------------
        y2 = jnp.maximum(
            jnp.dot(a2_scr[1:1 + M2, :], W2s,
                    preferred_element_type=jnp.float32) + b2, 0.0)      # (M2, 64)

        # ---- MaxPool(4): compact each batch segment to 4*P2 rows, then four
        #      global stride-4 loads (valid rows only; seam rows are dropped here).
        for b in range(B):
            y2_scr[b * T2:(b + 1) * T2, :] = y2[b * P1:b * P1 + T2, :]
        p2 = y2_scr[pl.ds(0, B * P2, stride=4), :]
        for j in range(1, 4):
            p2 = jnp.maximum(p2, y2_scr[pl.ds(j, B * P2, stride=4), :])  # (B*P2, 64)

        # ---- tap-fused conv3 input: a3_scr[q] = [ p2[q] | p2[q-1] ] --------------
        a3_scr[0:B * P2, 0:64] = p2
        a3_scr[1:B * P2 + 1, 64:128] = p2

        # ---- conv3 (64->128): ONE matmul, M=B*P2-1, K=128, N=128 -----------------
        y3 = jnp.maximum(
            jnp.dot(a3_scr[1:1 + M3, :], W3s,
                    preferred_element_type=jnp.float32) + b3, 0.0)      # (M3, 128)

        for b in range(B):
            y3_scr[b * T3:(b + 1) * T3, :] = y3[b * P2:b * P2 + T3, :]
        p3 = y3_scr[pl.ds(0, B * P3, stride=4), :]
        for j in range(1, 4):
            p3 = jnp.maximum(p3, y3_scr[pl.ds(j, B * P3, stride=4), :])  # (B*P3, 128)

        # ---- channel-major flatten + AdaptiveAvgPool1d(128) == per-batch mean over
        #      the P3 remaining time steps; done with stride-P3 loads so the (B,128)
        #      result is written with ONE lane-dense store.
        p3_scr[...] = p3                                                  # (B*P3, 128)
        acc = p3_scr[pl.ds(0, B, stride=P3), :]
        for i in range(1, P3):
            acc = acc + p3_scr[pl.ds(i, B, stride=P3), :]
        out_ref[...] = acc * (1.0 / P3)                                   # (B, 128)

    return kernel


def conv1d_network_forward(x, W1, b1, W2, b2, W3, b3):
    """x: (B, L) f32.  Weights in PyTorch ConvTranspose1d layout (Cin, Cout, K=2)."""
    x = x.astype(jnp.float32)
    B, L = x.shape
    assert W1.shape == (1, 32, 2) and W2.shape == (32, 64, 2) and W3.shape == (64, 128, 2)
    P1 = (L - 1) // 4          # length after conv1 + pool
    P2 = (P1 - 1) // 4         # after conv2 + pool
    P3 = (P2 - 1) // 4         # after conv3 + pool
    assert P3 >= 1, "input sequence too short for three conv+pool stages"

    # --- stage-1 phases (layout plumbing only): xs[b*P1 + i, j] = x[b, 4*i + j] ---
    cols = [x[:, j:j + 4 * P1:4] for j in range(5)]            # (B, P1) each
    xs = jnp.stack(cols, axis=-1).reshape(B * P1, 5)           # (B*P1, 5)

    # --- single lane-dense parameter slab (197, 128) ------------------------------
    def pad128(a):
        return jnp.pad(a.astype(jnp.float32), ((0, 0), (0, 128 - a.shape[-1])))

    W2s = jnp.concatenate([W2[:, :, 0], W2[:, :, 1]], axis=0)  # (64, 64)
    W3s = jnp.concatenate([W3[:, :, 0], W3[:, :, 1]], axis=0)  # (128, 128)
    slab = jnp.concatenate([
        W3s.astype(jnp.float32),                 # rows 0:128
        pad128(W2s),                             # rows 128:192
        pad128(b3.reshape(1, 128)),              # row 192
        pad128(b2.reshape(1, 64)),               # row 193
        pad128(W1[0, :, 0].reshape(1, 32)),      # row 194: multiplies x[t+1]
        pad128(W1[0, :, 1].reshape(1, 32)),      # row 195: multiplies x[t]
        pad128(b1.reshape(1, 32)),               # row 196
    ], axis=0)
    assert slab.shape == (_SLAB_ROWS, 128)

    vmem = pl.BlockSpec(memory_space=pltpu.MemorySpace.VMEM)
    return pl.pallas_call(
        _make_kernel(B, P1, P2, P3),
        out_shape=jax.ShapeDtypeStruct((B, 128), jnp.float32),
        in_specs=[vmem, vmem],
        out_specs=vmem,
        scratch_shapes=[
            pltpu.VMEM((B * P1 + 1, 64), jnp.float32),    # conv2 tap-pair input
            pltpu.VMEM((4 * B * P2, 64), jnp.float32),    # pool2 staging
            pltpu.VMEM((B * P2 + 1, 128), jnp.float32),   # conv3 tap-pair input
            pltpu.VMEM((4 * B * P3, 128), jnp.float32),   # pool3 staging
            pltpu.VMEM((B * P3, 128), jnp.float32),       # final mean staging
        ],
    )(xs, slab)


def _reference_forward(x, W1, b1, W2, b2, W3, b3):
    """Pure-JAX reference with identical semantics (correctness check)."""
    hi = jax.lax.Precision.HIGHEST

    def convt(h, W, b):   # h: (B, T, Cin) -> (B, T-1, Cout)
        return (jnp.einsum('btc,co->bto', h[:, 1:, :], W[:, :, 0], precision=hi)
                + jnp.einsum('btc,co->bto', h[:, :-1, :], W[:, :, 1], precision=hi)
                + b[None, None, :])

    def maxpool4(h):      # (B, T, C) -> (B, T//4, C)
        Bb, T, C = h.shape
        P = T // 4
        return h[:, :4 * P, :].reshape(Bb, P, 4, C).max(axis=2)

    h = x[:, :, None]
    h = maxpool4(jax.nn.relu(convt(h, W1, b1)))
    h = maxpool4(jax.nn.relu(convt(h, W2, b2)))
    h = maxpool4(jax.nn.relu(convt(h, W3, b3)))
    return h.mean(axis=1)   # AdaptiveAvgPool1d(128) after channel-major flatten


if __name__ == "__main__":
    B, L = 2, 200   # L=200 -> 199 -> 49 -> 48 -> 12 -> 11 -> 2 -> (B,128)

    key = jax.random.PRNGKey(0)
    k1, k2, k3, k4, k5, k6, kx = jax.random.split(key, 7)

    def _uinit(k, shape, fan):
        bound = 1.0 / np.sqrt(fan)
        return jax.random.uniform(k, shape, jnp.float32, -bound, bound)

    # PyTorch ConvTranspose1d weight layout: (in_channels, out_channels, K)
    W1 = _uinit(k1, (1, 32, 2), 1 * 2)
    b1 = _uinit(k2, (32,), 1 * 2)
    W2 = _uinit(k3, (32, 64, 2), 32 * 2)
    b2 = _uinit(k4, (64,), 32 * 2)
    W3 = _uinit(k5, (64, 128, 2), 64 * 2)
    b3 = _uinit(k6, (128,), 64 * 2)
    # NOTE: self.nor (BatchNorm1d) and self.pool3 (AdaptiveMaxPool1d) are unused in
    # the PyTorch forward, so they are intentionally not materialized here.

    x = jax.random.normal(kx, (B, L), jnp.float32)

    out = conv1d_network_forward(x, W1, b1, W2, b2, W3, b3)
    out = jax.block_until_ready(out)

    ref = _reference_forward(x, W1, b1, W2, b2, W3, b3)
    assert out.shape == (B, 128), out.shape
    if not bool(jnp.allclose(out, ref, atol=5e-3, rtol=5e-3)):
        raise SystemExit("Pallas kernel output does not match reference")
    print("KERNEL_OK")
</pallas_src>

<mosaic_0001>
module attributes {stable_mosaic.version = 11 : i64} {
  func.func @kernel(%arg0: memref<98x5xf32, #tpu.memory_space<vmem>>, %arg1: memref<197x128xf32, #tpu.memory_space<vmem>>, %arg2: memref<2x128xf32, #tpu.memory_space<vmem>>, %arg3: memref<99x64xf32, #tpu.memory_space<vmem>>, %arg4: memref<96x64xf32, #tpu.memory_space<vmem>>, %arg5: memref<25x128xf32, #tpu.memory_space<vmem>>, %arg6: memref<16x128xf32, #tpu.memory_space<vmem>>, %arg7: memref<4x128xf32, #tpu.memory_space<vmem>>) attributes {dimension_semantics = [], scalar_prefetch = 0 : i64, scratch_operands = 5 : i64, tpu.core_type = #tpu.core_type<tc>} {
    %c0 = arith.constant 0 : index
    %c0_0 = arith.constant 0 : index
    %0 = vector.load %arg1[%c0, %c0_0] : memref<197x128xf32, #tpu.memory_space<vmem>>, vector<128x128xf32>
    %c128 = arith.constant 128 : index
    %c0_1 = arith.constant 0 : index
    %1 = vector.load %arg1[%c128, %c0_1] : memref<197x128xf32, #tpu.memory_space<vmem>>, vector<64x64xf32>
    %c192 = arith.constant 192 : index
    %c0_2 = arith.constant 0 : index
    %2 = vector.load %arg1[%c192, %c0_2] : memref<197x128xf32, #tpu.memory_space<vmem>>, vector<1x128xf32>
    %c193 = arith.constant 193 : index
    %c0_3 = arith.constant 0 : index
    %3 = vector.load %arg1[%c193, %c0_3] : memref<197x128xf32, #tpu.memory_space<vmem>>, vector<1x64xf32>
    %c194 = arith.constant 194 : index
    %c0_4 = arith.constant 0 : index
    %4 = vector.load %arg1[%c194, %c0_4] : memref<197x128xf32, #tpu.memory_space<vmem>>, vector<1x32xf32>
    %c195 = arith.constant 195 : index
    %c0_5 = arith.constant 0 : index
    %5 = vector.load %arg1[%c195, %c0_5] : memref<197x128xf32, #tpu.memory_space<vmem>>, vector<1x32xf32>
    %c196 = arith.constant 196 : index
    %c0_6 = arith.constant 0 : index
    %6 = vector.load %arg1[%c196, %c0_6] : memref<197x128xf32, #tpu.memory_space<vmem>>, vector<1x32xf32>
    %c0_7 = arith.constant 0 : index
    %c0_8 = arith.constant 0 : index
    %7 = vector.load %arg0[%c0_7, %c0_8] : memref<98x5xf32, #tpu.memory_space<vmem>>, vector<98x1xf32>
    %c0_9 = arith.constant 0 : index
    %c1 = arith.constant 1 : index
    %8 = vector.load %arg0[%c0_9, %c1] : memref<98x5xf32, #tpu.memory_space<vmem>>, vector<98x1xf32>
    %c0_10 = arith.constant 0 : index
    %c2 = arith.constant 2 : index
    %9 = vector.load %arg0[%c0_10, %c2] : memref<98x5xf32, #tpu.memory_space<vmem>>, vector<98x1xf32>
    %c0_11 = arith.constant 0 : index
    %c3 = arith.constant 3 : index
    %10 = vector.load %arg0[%c0_11, %c3] : memref<98x5xf32, #tpu.memory_space<vmem>>, vector<98x1xf32>
    %c0_12 = arith.constant 0 : index
    %c4 = arith.constant 4 : index
    %11 = vector.load %arg0[%c0_12, %c4] : memref<98x5xf32, #tpu.memory_space<vmem>>, vector<98x1xf32>
    %12 = vector.broadcast %8 : vector<98x1xf32> to vector<98x32xf32>
    %13 = vector.broadcast %4 : vector<1x32xf32> to vector<98x32xf32>
    %14 = arith.mulf %12, %13 : vector<98x32xf32>
    %15 = vector.broadcast %7 : vector<98x1xf32> to vector<98x32xf32>
    %16 = vector.broadcast %5 : vector<1x32xf32> to vector<98x32xf32>
    %17 = arith.mulf %15, %16 : vector<98x32xf32>
    %18 = arith.addf %14, %17 : vector<98x32xf32>
    %19 = vector.broadcast %9 : vector<98x1xf32> to vector<98x32xf32>
    %20 = vector.broadcast %4 : vector<1x32xf32> to vector<98x32xf32>
    %21 = arith.mulf %19, %20 : vector<98x32xf32>
    %22 = vector.broadcast %8 : vector<98x1xf32> to vector<98x32xf32>
    %23 = vector.broadcast %5 : vector<1x32xf32> to vector<98x32xf32>
    %24 = arith.mulf %22, %23 : vector<98x32xf32>
    %25 = arith.addf %21, %24 : vector<98x32xf32>
    %26 = arith.maximumf %18, %25 : vector<98x32xf32>
    %27 = vector.broadcast %10 : vector<98x1xf32> to vector<98x32xf32>
    %28 = vector.broadcast %4 : vector<1x32xf32> to vector<98x32xf32>
    %29 = arith.mulf %27, %28 : vector<98x32xf32>
    %30 = vector.broadcast %9 : vector<98x1xf32> to vector<98x32xf32>
    %31 = vector.broadcast %5 : vector<1x32xf32> to vector<98x32xf32>
    %32 = arith.mulf %30, %31 : vector<98x32xf32>
    %33 = arith.addf %29, %32 : vector<98x32xf32>
    %34 = arith.maximumf %26, %33 : vector<98x32xf32>
    %35 = vector.broadcast %11 : vector<98x1xf32> to vector<98x32xf32>
    %36 = vector.broadcast %4 : vector<1x32xf32> to vector<98x32xf32>
    %37 = arith.mulf %35, %36 : vector<98x32xf32>
    %38 = vector.broadcast %10 : vector<98x1xf32> to vector<98x32xf32>
    %39 = vector.broadcast %5 : vector<1x32xf32> to vector<98x32xf32>
    %40 = arith.mulf %38, %39 : vector<98x32xf32>
    %41 = arith.addf %37, %40 : vector<98x32xf32>
    %42 = arith.maximumf %34, %41 : vector<98x32xf32>
    %43 = vector.broadcast %6 : vector<1x32xf32> to vector<98x32xf32>
    %44 = arith.addf %42, %43 : vector<98x32xf32>
    %cst = arith.constant 0.000000e+00 : f32
    %45 = vector.broadcast %cst : f32 to vector<98x32xf32>
    %46 = arith.maximumf %44, %45 : vector<98x32xf32>
    %c0_13 = arith.constant 0 : index
    %c0_14 = arith.constant 0 : index
    %47 = vector.load %arg3[%c0_13, %c0_14] : memref<99x64xf32, #tpu.memory_space<vmem>>, vector<98x32xf32>
    tpu.vector_store %arg3[%c0_13, %c0_14], %46 {strides = array<i32>} : memref<99x64xf32, #tpu.memory_space<vmem>>, vector<98x32xf32>,
    %c1_15 = arith.constant 1 : index
    %c32 = arith.constant 32 : index
    %48 = vector.load %arg3[%c1_15, %c32] : memref<99x64xf32, #tpu.memory_space<vmem>>, vector<98x32xf32>
    tpu.vector_store %arg3[%c1_15, %c32], %46 {strides = array<i32>} : memref<99x64xf32, #tpu.memory_space<vmem>>, vector<98x32xf32>,
    %c1_16 = arith.constant 1 : index
    %c0_17 = arith.constant 0 : index
    %49 = vector.load %arg3[%c1_16, %c0_17] : memref<99x64xf32, #tpu.memory_space<vmem>>, vector<97x64xf32>
    %cst_18 = arith.constant dense<0.000000e+00> : vector<97x64xf32>
    %50 = tpu.matmul %49, %1, %cst_18 {dimension_numbers = #tpu.dot_dimension_numbers<[1], [0], [0], [1], [0, 0, 1, 1], [], []>} : vector<97x64xf32>, vector<64x64xf32>, vector<97x64xf32> -> vector<97x64xf32>
    %51 = vector.broadcast %3 : vector<1x64xf32> to vector<97x64xf32>
    %52 = arith.addf %50, %51 : vector<97x64xf32>
    %cst_19 = arith.constant 0.000000e+00 : f32
    %53 = vector.broadcast %cst_19 : f32 to vector<97x64xf32>
    %54 = arith.maximumf %52, %53 : vector<97x64xf32>
    %55 = vector.extract_strided_slice %54 {offsets = [0, 0], sizes = [48, 64], strides = [1, 1]} : vector<97x64xf32> to vector<48x64xf32>
    %c0_20 = arith.constant 0 : index
    %c0_21 = arith.constant 0 : index
    %56 = vector.load %arg4[%c0_20, %c0_21] : memref<96x64xf32, #tpu.memory_space<vmem>>, vector<48x64xf32>
    tpu.vector_store %arg4[%c0_20, %c0_21], %55 {strides = array<i32>} : memref<96x64xf32, #tpu.memory_space<vmem>>, vector<48x64xf32>,
    %57 = vector.extract_strided_slice %54 {offsets = [49, 0], sizes = [48, 64], strides = [1, 1]} : vector<97x64xf32> to vector<48x64xf32>
    %c48 = arith.constant 48 : index
    %c0_22 = arith.constant 0 : index
    %58 = vector.load %arg4[%c48, %c0_22] : memref<96x64xf32, #tpu.memory_space<vmem>>, vector<48x64xf32>
    tpu.vector_store %arg4[%c48, %c0_22], %57 {strides = array<i32>} : memref<96x64xf32, #tpu.memory_space<vmem>>, vector<48x64xf32>,
    %c0_23 = arith.constant 0 : index
    %c0_24 = arith.constant 0 : index
    %59 = tpu.strided_load %arg4[%c0_23, %c0_24] {strides = array<i32: 4, 1>} : memref<96x64xf32, #tpu.memory_space<vmem>>, vector<24x64xf32>
    %c1_25 = arith.constant 1 : index
    %c0_26 = arith.constant 0 : index
    %60 = tpu.strided_load %arg4[%c1_25, %c0_26] {strides = array<i32: 4, 1>} : memref<96x64xf32, #tpu.memory_space<vmem>>, vector<24x64xf32>
    %61 = arith.maximumf %59, %60 : vector<24x64xf32>
    %c2_27 = arith.constant 2 : index
    %c0_28 = arith.constant 0 : index
    %62 = tpu.strided_load %arg4[%c2_27, %c0_28] {strides = array<i32: 4, 1>} : memref<96x64xf32, #tpu.memory_space<vmem>>, vector<24x64xf32>
    %63 = arith.maximumf %61, %62 : vector<24x64xf32>
    %c3_29 = arith.constant 3 : index
    %c0_30 = arith.constant 0 : index
    %64 = tpu.strided_load %arg4[%c3_29, %c0_30] {strides = array<i32: 4, 1>} : memref<96x64xf32, #tpu.memory_space<vmem>>, vector<24x64xf32>
    %65 = arith.maximumf %63, %64 : vector<24x64xf32>
    %c0_31 = arith.constant 0 : index
    %c0_32 = arith.constant 0 : index
    %66 = vector.load %arg5[%c0_31, %c0_32] : memref<25x128xf32, #tpu.memory_space<vmem>>, vector<24x64xf32>
    tpu.vector_store %arg5[%c0_31, %c0_32], %65 {strides = array<i32>} : memref<25x128xf32, #tpu.memory_space<vmem>>, vector<24x64xf32>,
    %c1_33 = arith.constant 1 : index
    %c64 = arith.constant 64 : index
    %67 = vector.load %arg5[%c1_33, %c64] : memref<25x128xf32, #tpu.memory_space<vmem>>, vector<24x64xf32>
    tpu.vector_store %arg5[%c1_33, %c64], %65 {strides = array<i32>} : memref<25x128xf32, #tpu.memory_space<vmem>>, vector<24x64xf32>,
    %c1_34 = arith.constant 1 : index
    %c0_35 = arith.constant 0 : index
    %68 = vector.load %arg5[%c1_34, %c0_35] : memref<25x128xf32, #tpu.memory_space<vmem>>, vector<23x128xf32>
    %cst_36 = arith.constant dense<0.000000e+00> : vector<23x128xf32>
    %69 = tpu.matmul %68, %0, %cst_36 {dimension_numbers = #tpu.dot_dimension_numbers<[1], [0], [0], [1], [0, 0, 1, 1], [], []>} : vector<23x128xf32>, vector<128x128xf32>, vector<23x128xf32> -> vector<23x128xf32>
    %70 = vector.broadcast %2 : vector<1x128xf32> to vector<23x128xf32>
    %71 = arith.addf %69, %70 : vector<23x128xf32>
    %cst_37 = arith.constant 0.000000e+00 : f32
    %72 = vector.broadcast %cst_37 : f32 to vector<23x128xf32>
    %73 = arith.maximumf %71, %72 : vector<23x128xf32>
    %74 = vector.extract_strided_slice %73 {offsets = [0, 0], sizes = [8, 128], strides = [1, 1]} : vector<23x128xf32> to vector<8x128xf32>
    %c0_38 = arith.constant 0 : index
    %c0_39 = arith.constant 0 : index
    %75 = vector.load %arg6[%c0_38, %c0_39] : memref<16x128xf32, #tpu.memory_space<vmem>>, vector<8x128xf32>
    tpu.vector_store %arg6[%c0_38, %c0_39], %74 {strides = array<i32>} : memref<16x128xf32, #tpu.memory_space<vmem>>, vector<8x128xf32>,
    %76 = vector.extract_strided_slice %73 {offsets = [12, 0], sizes = [8, 128], strides = [1, 1]} : vector<23x128xf32> to vector<8x128xf32>
    %c8 = arith.constant 8 : index
    %c0_40 = arith.constant 0 : index
    %77 = vector.load %arg6[%c8, %c0_40] : memref<16x128xf32, #tpu.memory_space<vmem>>, vector<8x128xf32>
    tpu.vector_store %arg6[%c8, %c0_40], %76 {strides = array<i32>} : memref<16x128xf32, #tpu.memory_space<vmem>>, vector<8x128xf32>,
    %c0_41 = arith.constant 0 : index
    %c0_42 = arith.constant 0 : index
    %78 = tpu.strided_load %arg6[%c0_41, %c0_42] {strides = array<i32: 4, 1>} : memref<16x128xf32, #tpu.memory_space<vmem>>, vector<4x128xf32>
    %c1_43 = arith.constant 1 : index
    %c0_44 = arith.constant 0 : index
    %79 = tpu.strided_load %arg6[%c1_43, %c0_44] {strides = array<i32: 4, 1>} : memref<16x128xf32, #tpu.memory_space<vmem>>, vector<4x128xf32>
    %80 = arith.maximumf %78, %79 : vector<4x128xf32>
    %c2_45 = arith.constant 2 : index
    %c0_46 = arith.constant 0 : index
    %81 = tpu.strided_load %arg6[%c2_45, %c0_46] {strides = array<i32: 4, 1>} : memref<16x128xf32, #tpu.memory_space<vmem>>, vector<4x128xf32>
    %82 = arith.maximumf %80, %81 : vector<4x128xf32>
    %c3_47 = arith.constant 3 : index
    %c0_48 = arith.constant 0 : index
    %83 = tpu.strided_load %arg6[%c3_47, %c0_48] {strides = array<i32: 4, 1>} : memref<16x128xf32, #tpu.memory_space<vmem>>, vector<4x128xf32>
    %84 = arith.maximumf %82, %83 : vector<4x128xf32>
    %c0_49 = arith.constant 0 : index
    %c0_50 = arith.constant 0 : index
    %85 = vector.load %arg7[%c0_49, %c0_50] : memref<4x128xf32, #tpu.memory_space<vmem>>, vector<4x128xf32>
    tpu.vector_store %arg7[%c0_49, %c0_50], %84 {strides = array<i32>} : memref<4x128xf32, #tpu.memory_space<vmem>>, vector<4x128xf32>,
    %c0_51 = arith.constant 0 : index
    %c0_52 = arith.constant 0 : index
    %86 = tpu.strided_load %arg7[%c0_51, %c0_52] {strides = array<i32: 2, 1>} : memref<4x128xf32, #tpu.memory_space<vmem>>, vector<2x128xf32>
    %c1_53 = arith.constant 1 : index
    %c0_54 = arith.constant 0 : index
    %87 = tpu.strided_load %arg7[%c1_53, %c0_54] {strides = array<i32: 2, 1>} : memref<4x128xf32, #tpu.memory_space<vmem>>, vector<2x128xf32>
    %88 = arith.addf %86, %87 : vector<2x128xf32>
    %cst_55 = arith.constant 5.000000e-01 : f32
    %89 = vector.broadcast %cst_55 : f32 to vector<2x128xf32>
    %90 = arith.mulf %88, %89 : vector<2x128xf32>
    %c0_56 = arith.constant 0 : index
    %c0_57 = arith.constant 0 : index
    %91 = vector.load %arg2[%c0_56, %c0_57] : memref<2x128xf32, #tpu.memory_space<vmem>>, vector<2x128xf32>
    tpu.vector_store %arg2[%c0_56, %c0_57], %90 {strides = array<i32>} : memref<2x128xf32, #tpu.memory_space<vmem>>, vector<2x128xf32>,
    return
  }
}

</mosaic_0001>

<bundles_post_ra>
// kernel: tpu_custom_call.1
= control target key start
LH: loop header
LB: loop body
LE: loop exit
PB: predicated region body
PF: predicated region fallthrough
CT: control target
= control target key end

     0   :  { %7 = vsyncpa [#allocation8], 0  ;;  %s1847_s0 = inlined_call_operand.vmem [shape: f32[98,5], index: 0, kind: input, shape index: {}]   ;;  %s1848_s1 = inlined_call_operand.hbm [shape: f32[197,128], index: 1, kind: input, shape index: {}]   ;;  %s1849_s2 = inlined_call_operand.hbm [shape: f32[2,128], index: 2, kind: output, shape index: {}]  }
   0x1   :  { %8 = vsyncpa [#allocation9], 0  ;;  %s1350_s9 = smov [#allocation7]   ;;  %s1302_s13 = scalar_lea.hbm %s1848_s1, 3200 }
   0x2   :  { %s16_s10 = sshll.u32 %s1350_s9, 4  ;;  %p1303_p0 = scmp.ne.s32.totalorder %s1848_s1, %s1302_s13  ;;  %s17_s10 = int_to_ptr.vmem [resolvable:$true] %s16_s10 }
   0x3   :  { %p1306_p1 = scmp.lt.u32.totalorder %s1302_s13, %s1848_s1 }
   0x5   :  { %p1308_p2 = pnand %p1306_p1, %p1303_p0 }
   0x7   :  { %1311 = shalt.err (!%p1308_p2)
}
   0x8   :  { %s1312_s18 = scalar_lea.vmem %s17_s10, 3200  ;;  %p1317_p4 = scmp.lt.s32.totalorder %s17_s10, %s17_s10 }
   0x9   :  { %p1313_p3 = scmp.ne.s32.totalorder %s17_s10, %s1312_s18  ;;  %p1318_p5 = scmp.lt.s32.totalorder %s1312_s18, %s1312_s18 }
   0xb   :  { %p1319_p6 = por %p1318_p5, %p1317_p4 }
   0xd   :  { %p1320_p7 = pnand %p1319_p6, %p1313_p3 }
   0xf   :  { %1323 = shalt.err (!%p1320_p7)
}
  0x10   :  { %s1351_s19 = smov 128   ;;  %s1352_s20 = smov 8  }
  0x11   :  { %22 = dma.hbm_to_vmem [thread:$0]  %s1848_s1, 3200, %s17_s10, [#allocation8], %s1351_s19, %s1351_s19, %s1352_s20  }
  0x12   :  { %1346 = dma.done.wait [#allocation8], 3200  }
  0x13   :  { %1347 = vsyncadd [#allocation8], 4294964096  ;;  %v1353_v0 = vmov 2   ;;  %v1354_v1 = vmov 0   ;;  %v55_v2 = vld [vmem:[%s1847_s0] sm:$0xff]  ;;  %v56_v3 = vld [vmem:[%s1847_s0 + $0x8] sm:$0xff] }
  0x14   :  { %1252 = vset.pattern.permute.xlu1 %v1353_v0  ;;  %1251 = vset.pattern.permute.xlu0 %v1354_v1  ;;  %v1355_v4 = vmov 3   ;;  %v57_v5 = vld [vmem:[%s1847_s0 + $0x10] sm:$0xff]  ;;  %v1356_v6 = vmov 1   ;;  %v1409_v7 = vld [vmem:[%s1847_s0 + $0x28] sm:$0xff]  ;;  %v58_v8 = vld [vmem:[%s1847_s0 + $0x18] sm:$0xff]  ;;  %v1357_v11 = vmov 4  }
  0x15   :  { %233 = vperm.xlu1 %1252, %v55_v2   ;;  %151 = vperm.xlu0 %1251, %v55_v2   ;;  %v1420_v9 = vld [vmem:[%s1847_s0 + $0x30] sm:$0xff]  ;;  %v1427_v10 = vld [vmem:[%s1847_s0 + $0x48] sm:$0xff]  ;;  %v59_v12 = vld [vmem:[%s1847_s0 + $0x20] sm:$0xff]  ;;  %vm574_vm0 = vcmask 261120   ;;  %vm1360_vm1 = vmmov 0   ;;  %vm641_vm2 = vcmask 523520  }
  0x16   :  { %v1440_v13 = vld [vmem:[%s1847_s0 + $0x38] sm:$0xff]  ;;  %v1447_v14 = vld [vmem:[%s1847_s0 + $0x50] sm:$0xff]  ;;  %v63_v15 = vld [vmem:[%s1847_s0 + $0x40] sm:$0xff]  ;;  %vm587_vm3 = vcmask 254976   ;;  %vm673_vm4 = vcmask 523264   ;;  %vm654_vm5 = vcmask 517376  }
  0x17   :  { %v1467_v16 = vld [vmem:[%s1847_s0 + $0x58] sm:$0xff]  ;;  %v1479_v17 = vld [vmem:[%s1847_s0 + $0x60] sm:$0x3]  ;;  %s1358_s0 = smov 32   ;;  %vm862_vm6 = vcmask 523265   ;;  %s1362_s20 = smov 64  }
  0x18   :  { %v1520_v31 = vld [vmem:[#allocation7 + $0xc2] ss:$0 sm:$0xff]  ;;  %v1525_v33 = vld [vmem:[#allocation7 + $0xc3] ss:$0 sm:$0xff]  ;;  %v1542_v52 = vld [vmem:[#allocation7 + $0xc4] ss:$0 sm:$0xff] }
  0x19   :  { %1253 = vset.pattern.permute.xlu1 %v1355_v4  ;;  %155 = vperm.xlu0 %1251, %v56_v3   ;;  %vm869_vm7 = vcmask 516096   ;;  %vm918_vm8 = vcmask 1048064   ;;  %s1363_s21 = smov [#allocation10]  }
  0x1a   :  { %337 = vperm.xlu1 %1253, %v55_v2   ;;  %s1038_s22 = sshll.u32 %s1363_s21, 4  ;;  %s1039_s22 = int_to_ptr.vmem [resolvable:$true] %s1038_s22 }
  0x1b   :  { %s1324_s23 = scalar_lea.vmem %s1039_s22, 32  ;;  %p1329_p9 = scmp.lt.s32.totalorder %s1039_s22, %s1039_s22 }
  0x1c   :  { %p1325_p8 = scmp.ne.s32.totalorder %s1039_s22, %s1324_s23  ;;  %p1330_p10 = scmp.lt.s32.totalorder %s1324_s23, %s1324_s23 }
  0x1d   :  { %159 = vperm.xlu0 %1251, %v57_v5  }
  0x1e   :  { %1254 = vset.pattern.permute.xlu1 %v1356_v6  ;;  %p1331_p11 = por %p1330_p10, %p1329_p9 }
  0x1f   :  { %75 = vperm.xlu1 %1254, %v56_v3  }
  0x20   :  { %p1332_p12 = pnand %p1331_p11, %p1325_p8 }
  0x21   :  { %1260 = vset.pattern.permute.xlu0 %v1355_v4 }
  0x22   :  { %345 = vperm.xlu0 %1260, %v57_v5  }
  0x23   :  { %1255 = vset.pattern.permute.xlu1 %v1353_v0 }
  0x24   :  { %237 = vperm.xlu1 %1255, %v56_v3  }
  0x26   :  { %357 = vperm.xlu0 %1260, %v1409_v7  }
  0x28   :  { %1256 = vset.pattern.permute.xlu1 %v1355_v4 }
  0x29   :  { %341 = vperm.xlu1 %1256, %v56_v3  }
  0x2a   :  { %1271 = vset.pattern.permute.xlu0 %v1353_v0 }
  0x2b   :  { %245 = vperm.xlu0 %1271, %v58_v8  }
  0x2d   :  { %1257 = vset.pattern.permute.xlu1 %v1356_v6 }
  0x2e   :  { %80 = vperm.xlu1 %1257, %v57_v5  }
  0x2f   :  { %257 = vperm.xlu0 %1271, %v1420_v9  }
  0x32   :  { %1258 = vset.pattern.permute.xlu1 %v1353_v0 }
  0x33   :  { %241 = vperm.xlu1 %1258, %v57_v5   ;;  %269 = vperm.xlu0 %1271, %v1427_v10  }
  0x37   :  { %1259 = vset.pattern.permute.xlu1 %v1357_v11  ;;  %1284 = vset.pattern.permute.xlu0 %v1356_v6 }
  0x38   :  { %445 = vperm.xlu1 %1259, %v56_v3   ;;  %70 = vperm.xlu0 %1284, %v55_v2  }
  0x3c   :  { %1261 = vset.pattern.permute.xlu1 %v1356_v6  ;;  %90 = vperm.xlu0 %1284, %v59_v12  }
  0x3d   :  { %85 = vperm.xlu1 %1261, %v58_v8  }
  0x40   :  { %105 = vperm.xlu0 %1284, %v1440_v13  }
  0x41   :  { %1262 = vset.pattern.permute.xlu1 %v1354_v1 }
  0x42   :  { %163 = vperm.xlu1 %1262, %v58_v8  }
  0x44   :  { %120 = vperm.xlu0 %1284, %v1447_v14  }
  0x46   :  { %1263 = vset.pattern.permute.xlu1 %v1357_v11 }
  0x47   :  { %449 = vperm.xlu1 %1263, %v57_v5  }
  0x48   :  { %1287 = vset.pattern.permute.xlu0 %v1357_v11 }
  0x49   :  { %441 = vperm.xlu0 %1287, %v55_v2  }
  0x4b   :  { %1264 = vset.pattern.permute.xlu1 %v1355_v4 }
  0x4c   :  { %349 = vperm.xlu1 %1264, %v58_v8  }
  0x4d   :  { %453 = vperm.xlu0 %1287, %v58_v8  }
  0x50   :  { %1265 = vset.pattern.permute.xlu1 %v1354_v1 }
  0x51   :  { %167 = vperm.xlu1 %1265, %v59_v12   ;;  %465 = vperm.xlu0 %1287, %v1420_v9  }
  0x55   :  { %1266 = vset.pattern.permute.xlu1 %v1353_v0  ;;  %477 = vperm.xlu0 %1287, %v1427_v10  }
  0x56   :  { %249 = vperm.xlu1 %1266, %v59_v12  }
  0x59   :  { %1290 = vset.pattern.permute.xlu0 %v1354_v1 }
  0x5a   :  { %1267 = vset.pattern.permute.xlu1 %v1355_v4  ;;  %171 = vperm.xlu0 %1290, %v1409_v7  }
  0x5b   :  { %353 = vperm.xlu1 %1267, %v59_v12  }
  0x5e   :  { %183 = vperm.xlu0 %1290, %v63_v15  }
  0x5f   :  { %1268 = vset.pattern.permute.xlu1 %v1356_v6 }
  0x60   :  { %95 = vperm.xlu1 %1268, %v1409_v7  }
  0x62   :  { %195 = vperm.xlu0 %1290, %v1467_v16  }
  0x64   :  { %1269 = vset.pattern.permute.xlu1 %v1353_v0 }
  0x65   :  { %253 = vperm.xlu1 %1269, %v1409_v7  }
  0x66   :  { %1293 = vset.pattern.permute.xlu0 %v1355_v4 }
  0x67   :  { %369 = vperm.xlu0 %1293, %v63_v15  }
  0x69   :  { %1270 = vset.pattern.permute.xlu1 %v1357_v11 }
  0x6a   :  { %457 = vperm.xlu1 %1270, %v59_v12  }
  0x6b   :  { %381 = vperm.xlu0 %1293, %v1467_v16  }
  0x6e   :  { %1272 = vset.pattern.permute.xlu1 %v1356_v6 }
  0x6f   :  { %100 = vperm.xlu1 %1272, %v1420_v9   ;;  %1298 = vset.pattern.permute.xlu0 %v1353_v0 }
  0x70   :  { %281 = vperm.xlu0 %1298, %v1479_v17  }
  0x73   :  { %1273 = vset.pattern.permute.xlu1 %v1354_v1 }
  0x74   :  { %175 = vperm.xlu1 %1273, %v1420_v9   ;;  %1301 = vset.pattern.permute.xlu0 %v1357_v11 }
  0x75   :  { %489 = vperm.xlu0 %1301, %v1479_v17  }
  0x78   :  { %1274 = vset.pattern.permute.xlu1 %v1357_v11 }
  0x79   :  { %461 = vperm.xlu1 %1274, %v1409_v7  }
  0x7d   :  { %1275 = vset.pattern.permute.xlu1 %v1355_v4 }
  0x7e   :  { %361 = vperm.xlu1 %1275, %v1420_v9  }
  0x82   :  { %1276 = vset.pattern.permute.xlu1 %v1354_v1 }
  0x83   :  { %179 = vperm.xlu1 %1276, %v1440_v13  }
  0x87   :  { %1277 = vset.pattern.permute.xlu1 %v1353_v0 }
  0x88   :  { %261 = vperm.xlu1 %1277, %v1440_v13  }
  0x8c   :  { %1278 = vset.pattern.permute.xlu1 %v1355_v4 }
  0x8d   :  { %365 = vperm.xlu1 %1278, %v1440_v13  }
  0x91   :  { %1279 = vset.pattern.permute.xlu1 %v1356_v6 }
  0x92   :  { %110 = vperm.xlu1 %1279, %v63_v15  }
  0x94   :  { %v1500_v18 = vpop.permute.xlu1 %233  ;;  %v152_v19 = vpop.permute.xlu0 %151 }
  0x95   :  { %v206_v56 = vmul.f32 %v1525_v33, %v152_v19  ;;  %v284_v3 = vmul.f32 %v1520_v31, %v1500_v18 }
  0x96   :  { %1280 = vset.pattern.permute.xlu1 %v1353_v0 }
  0x97   :  { %265 = vperm.xlu1 %1280, %v63_v15  }
  0x98   :  { %v156_v20 = vpop.permute.xlu0 %155 }
  0x99   :  { %v1503_v21 = vpop.permute.xlu1 %337  ;;  %v207_v34 = vmul.f32 %v1525_v33, %v156_v20 }
  0x9a   :  { %v388_v19 = vmul.f32 %v1520_v31, %v1503_v21 }
  0x9b   :  { %1281 = vset.pattern.permute.xlu1 %v1357_v11 }
  0x9c   :  { %469 = vperm.xlu1 %1281, %v1440_v13   ;;  %v160_v22 = vpop.permute.xlu0 %159 }
  0x9d   :  { %v208_v57 = vmul.f32 %v1525_v33, %v160_v22 }
  0x9e   :  { %v76_v23 = vpop.permute.xlu1 %75 }
  0x9f   :  { %v138_v35 = vmul.f32 %v1520_v31, %v76_v23  ;;  %v298_v36 = vmul.f32 %v1525_v33, %v76_v23 }
  0xa0   :  { %1282 = vset.pattern.permute.xlu1 %v1356_v6 }
  0xa1   :  { %115 = vperm.xlu1 %1282, %v1427_v10   ;;  %v1509_v24 = vpop.permute.xlu0 %345  ;;  %v220_v42 = vadd.f32 %v207_v34, %v138_v35  ;;  %v505_v35 = vmul.f32 %v1525_v33, %v1503_v21 }
  0xa2   :  { %v390_v8 = vmul.f32 %v1520_v31, %v1509_v24  ;;  %v507_v20 = vmul.f32 %v1525_v33, %v1509_v24 }
  0xa3   :  { %v238_v25 = vpop.permute.xlu1 %237 }
  0xa4   :  { %v285_v32 = vmul.f32 %v1520_v31, %v238_v25  ;;  %v402_v41 = vmul.f32 %v1525_v33, %v238_v25 }
  0xa5   :  { %1283 = vset.pattern.permute.xlu1 %v1354_v1  ;;  %v1512_v26 = vpop.permute.xlu0 %357 }
  0xa6   :  { %187 = vperm.xlu1 %1283, %v1427_v10   ;;  %v311_v40 = vadd.f32 %v298_v36, %v285_v32 }
  0xa8   :  { %v342_v27 = vpop.permute.xlu1 %341  ;;  %v324_v46 = vmax.f32 %v220_v42, %v311_v40 }
  0xa9   :  { %v389_v37 = vmul.f32 %v1520_v31, %v342_v27  ;;  %v506_v47 = vmul.f32 %v1525_v33, %v342_v27  ;;  %v401_v27 = vmul.f32 %v1525_v33, %v1500_v18 }
  0xaa   :  { %1285 = vset.pattern.permute.xlu1 %v1357_v11  ;;  %v1516_v28 = vpop.permute.xlu0 %245 }
  0xab   :  { %473 = vperm.xlu1 %1285, %v63_v15   ;;  %v415_v43 = vadd.f32 %v402_v41, %v389_v37  ;;  %v287_v36 = vmul.f32 %v1520_v31, %v1516_v28  ;;  %v414_v40 = vadd.f32 %v401_v27, %v388_v19  ;;  %v404_v21 = vmul.f32 %v1525_v33, %v1516_v28 }
  0xad   :  { %v81_v29 = vpop.permute.xlu1 %80  ;;  %v428_v49 = vmax.f32 %v324_v46, %v415_v43 }
  0xae   :  { %v1518_v30 = vpop.permute.xlu0 %257  ;;  %v139_v59 = vmul.f32 %v1520_v31, %v81_v29  ;;  %v299_v60 = vmul.f32 %v1525_v33, %v81_v29 }
  0xaf   :  { %1286 = vset.pattern.permute.xlu1 %v1355_v4 }
  0xb0   :  { %373 = vperm.xlu1 %1286, %v1427_v10   ;;  %v221_v9 = vadd.f32 %v208_v57, %v139_v59 }
  0xb2   :  { %v242_v38 = vpop.permute.xlu1 %241  ;;  %v1531_v39 = vpop.permute.xlu0 %269 }
  0xb3   :  { %v286_v55 = vmul.f32 %v1520_v31, %v242_v38  ;;  %v403_v10 = vmul.f32 %v1525_v33, %v242_v38 }
  0xb4   :  { %1288 = vset.pattern.permute.xlu1 %v1354_v1 }
  0xb5   :  { %191 = vperm.xlu1 %1288, %v1447_v14   ;;  %v312_v5 = vadd.f32 %v299_v60, %v286_v55  ;;  %v416_v29 = vadd.f32 %v403_v10, %v390_v8  ;;  %v42_v10 = vld [vmem:[#allocation7 + $0x80] sm:$0xff] }
  0xb7   :  { %v446_v44 = vpop.permute.xlu1 %445  ;;  %v71_v45 = vpop.permute.xlu0 %70  ;;  %v325_v22 = vmax.f32 %v221_v9, %v312_v5 }
  0xb8   :  { %v493_v48 = vmul.f32 %v1520_v31, %v446_v44  ;;  %v137_v61 = vmul.f32 %v1520_v31, %v71_v45  ;;  %v297_v62 = vmul.f32 %v1525_v33, %v71_v45 }
  0xb9   :  { %1289 = vset.pattern.permute.xlu1 %v1353_v0  ;;  %v429_v41 = vmax.f32 %v325_v22, %v416_v29 }
  0xba   :  { %v519_v50 = vadd.f32 %v506_v47, %v493_v48  ;;  %273 = vperm.xlu1 %1289, %v1447_v14   ;;  %v219_v12 = vadd.f32 %v206_v56, %v137_v61  ;;  %v310_v13 = vadd.f32 %v297_v62, %v284_v3 }
  0xbb   :  { %v1540_v51 = vpop.permute.xlu0 %90 }
  0xbc   :  { %v532_v53 = vmax.f32 %v428_v49, %v519_v50  ;;  %v86_v54 = vpop.permute.xlu1 %85  ;;  %v323_v32 = vmax.f32 %v219_v12, %v310_v13  ;;  %v43_v12 = vld [vmem:[#allocation7 + $0x88] sm:$0xff]  ;;  %v1359_v13 = vmov 0.0|0.0   ;;  %v301_v22 = vmul.f32 %v1525_v33, %v1540_v51 }
  0xbd   :  { %v140_v37 = vmul.f32 %v1520_v31, %v86_v54  ;;  %v300_v24 = vmul.f32 %v1525_v33, %v86_v54  ;;  %1201 = vmatprep.subr.bf16.mxu0 %v1359_v13  ;;  %1213 = vmatprep.subr.bf16.mxu1 %v1359_v13 }
  0xbe   :  { %1291 = vset.pattern.permute.xlu1 %v1355_v4  ;;  %v1549_v58 = vadd.f32 %v1542_v52, %v532_v53  ;;  %v427_v45 = vmax.f32 %v323_v32, %v414_v40  ;;  %v49_v40 = vld [vmem:[#allocation7 + $0xb8] sm:$0xff] }
  0xbf   :  { %377 = vperm.xlu1 %1291, %v1447_v14   ;;  %v1556_v63 = vpop.permute.xlu0 %105  ;;  %v313_v48 = vadd.f32 %v300_v24, %v287_v36 }
  0xc0   :  { %v562_v2 = vmax.f32 %v1549_v58, 0.0 }
  0xc1   :  { %v164_v7 = vpop.permute.xlu1 %163 }
  0xc2   :  { %576 = vst.msk [vmem:[#allocation2 + $0x8] sm:$0xff] %vm574_vm0, %v562_v2  ;;  %v209_v23 = vmul.f32 %v1525_v33, %v164_v7 }
  0xc3   :  { %1292 = vset.pattern.permute.xlu1 %v1356_v6  ;;  %v1568_v15 = vpop.permute.xlu0 %120 }
  0xc4   :  { %125 = vperm.xlu1 %1292, %v1467_v16   ;;  %v222_v43 = vadd.f32 %v209_v23, %v140_v37 }
  0xc6   :  { %v450_v25 = vpop.permute.xlu1 %449  ;;  %v326_v56 = vmax.f32 %v222_v43, %v313_v48 }
  0xc7   :  { %v494_v34 = vmul.f32 %v1520_v31, %v450_v25  ;;  %v141_v25 = vmul.f32 %v1520_v31, %v1540_v51 }
  0xc8   :  { %1294 = vset.pattern.permute.xlu1 %v1353_v0  ;;  %v442_v38 = vpop.permute.xlu0 %441 }
  0xc9   :  { %v520_v18 = vadd.f32 %v507_v20, %v494_v34  ;;  %v492_v42 = vmul.f32 %v1520_v31, %v442_v38  ;;  %277 = vperm.xlu1 %1294, %v1467_v16   ;;  %v45_v20 = vld [vmem:[#allocation7 + $0x98] sm:$0xff]  ;;  %v46_v34 = vld [vmem:[#allocation7 + $0xa0] sm:$0xff]  ;;  %v48_v38 = vld [vmem:[#allocation7 + $0xb0] sm:$0xff] }
  0xcb   :  { %v533_v44 = vmax.f32 %v429_v41, %v520_v18  ;;  %v518_v46 = vadd.f32 %v505_v35, %v492_v42  ;;  %v350_v47 = vpop.permute.xlu1 %349  ;;  %v47_v35 = vld [vmem:[#allocation7 + $0xa8] sm:$0xff]  ;;  %v1211_v42 = vpack.c.bf16 %v49_v40, %v48_v38  ;;  %v304_v38 = vmul.f32 %v1525_v33, %v1556_v63 }
  0xcc   :  { %v391_v49 = vmul.f32 %v1520_v31, %v350_v47  ;;  %v508_v0 = vmul.f32 %v1525_v33, %v350_v47  ;;  %v454_v50 = vpop.permute.xlu0 %453 }
  0xcd   :  { %v531_v53 = vmax.f32 %v427_v45, %v518_v46  ;;  %v495_v54 = vmul.f32 %v1520_v31, %v454_v50  ;;  %1295 = vset.pattern.permute.xlu1 %v1357_v11  ;;  %v550_v55 = vadd.f32 %v1542_v52, %v533_v44  ;;  %v1361_v44 = vmov 0.0  }
  0xce   :  { %v417_v28 = vadd.f32 %v404_v21, %v391_v49  ;;  %481 = vperm.xlu1 %1295, %v1447_v14   ;;  %1121 = vmatprep.mubr.msk.f32.mxu0 %vm1360_vm1, %v1361_v44 }
  0xcf   :  { %v521_v57 = vadd.f32 %v508_v0, %v495_v54  ;;  %v563_v59 = vmax.f32 %v550_v55, 0.0  ;;  %v548_v60 = vadd.f32 %v1542_v52, %v531_v53  ;;  %1192 = vmatprep.mubr.msk.f32.mxu1 %vm1360_vm1, %v1361_v44 }
  0xd0   :  { %v430_v61 = vmax.f32 %v326_v56, %v417_v28  ;;  %v168_v62 = vpop.permute.xlu1 %167  ;;  %v1615_v23 = vpop.permute.xlu0 %465  ;;  %v393_v28 = vmul.f32 %v1520_v31, %v1512_v26 }
  0xd1   :  { %606 = vrot.lane.b32.xlu0 %v563_v59, %s1358_s0  ;;  %577 = vst.msk [vmem:[#allocation2 + $0x10] sm:$0xff] %vm574_vm0, %v563_v59  ;;  %v561_v3 = vmax.f32 %v548_v60, 0.0  ;;  %v210_v27 = vmul.f32 %v1525_v33, %v168_v62  ;;  %v510_v60 = vmul.f32 %v1525_v33, %v1512_v26 }
  0xd2   :  { %v534_v5 = vmax.f32 %v430_v61, %v521_v57  ;;  %1296 = vset.pattern.permute.xlu1 %v1356_v6  ;;  %v1202_v6 = vpack.c.bf16 %v43_v12, %v42_v10 }
  0xd3   :  { %130 = vperm.xlu1 %1296, %v1479_v17   ;;  %575 = vst.msk [vmem:[#allocation2] sm:$0xff] %vm574_vm0, %v561_v3 }
  0xd4   :  { %v551_v14 = vadd.f32 %v1542_v52, %v534_v5  ;;  %1203 = vmatpush3.bf16.msra.mxu0 %v1202_v6  ;;  %v1625_v51 = vpop.permute.xlu0 %477  ;;  %v407_v6 = vmul.f32 %v1525_v33, %v1518_v30 }
  0xd5   :  { %v250_v7 = vpop.permute.xlu1 %249  ;;  %1204 = vmatprep.subr.bf16.mxu0 %v1359_v13 }
  0xd6   :  { %v564_v8 = vmax.f32 %v551_v14, 0.0  ;;  %v405_v37 = vmul.f32 %v1525_v33, %v250_v7 }
  0xd7   :  { %1297 = vset.pattern.permute.xlu1 %v1354_v1  ;;  %v44_v1 = vld [vmem:[#allocation7 + $0x90] sm:$0xff] }
  0xd8   :  { %199 = vperm.xlu1 %1297, %v1479_v17   ;;  %578 = vst.msk [vmem:[#allocation2 + $0x18] sm:$0xff] %vm574_vm0, %v564_v8 }
  0xd9   :  { %v172_v47 = vpop.permute.xlu0 %171 }
  0xda   :  { %v354_v9 = vpop.permute.xlu1 %353  ;;  %v211_v53 = vmul.f32 %v1525_v33, %v172_v47 }
  0xdb   :  { %v392_v29 = vmul.f32 %v1520_v31, %v354_v9  ;;  %v509_v21 = vmul.f32 %v1525_v33, %v354_v9 }
  0xdc   :  { %1299 = vset.pattern.permute.xlu1 %v1357_v11  ;;  %v288_v11 = vmul.f32 %v1520_v31, %v250_v7  ;;  %v290_v7 = vmul.f32 %v1520_v31, %v1518_v30 }
  0xdd   :  { %485 = vperm.xlu1 %1299, %v1467_v16   ;;  %v1205_v16 = vpack.c.bf16 %v45_v20, %v44_v1  ;;  %v418_v24 = vadd.f32 %v405_v37, %v392_v29  ;;  %v498_v20 = vmul.f32 %v1520_v31, %v1615_v23 }
  0xde   :  { %v314_v36 = vadd.f32 %v301_v22, %v288_v11 }
  0xdf   :  { %v96_v19 = vpop.permute.xlu1 %95  ;;  %1206 = vmatpush3.bf16.msra.mxu0 %v1205_v16 }
  0xe0   :  { %1207 = vmatprep.subr.bf16.mxu0 %v1359_v13  ;;  %v302_v50 = vmul.f32 %v1525_v33, %v96_v19 }
  0xe1   :  { %1300 = vset.pattern.permute.xlu1 %v1355_v4  ;;  %v1208_v4 = vpack.c.bf16 %v47_v35, %v46_v34 }
  0xe2   :  { %385 = vperm.xlu1 %1300, %v1479_v17   ;;  %v223_v17 = vadd.f32 %v210_v27, %v141_v25 }
  0xe3   :  { %1209 = vmatpush3.bf16.msra.mxu0 %v1208_v4 }
  0xe4   :  { %v254_v32 = vpop.permute.xlu1 %253  ;;  %1210 = vmatprep.subr.bf16.mxu0 %v1359_v13  ;;  %v327_v41 = vmax.f32 %v223_v17, %v314_v36 }
  0xe5   :  { %v289_v0 = vmul.f32 %v1520_v31, %v254_v32  ;;  %v406_v59 = vmul.f32 %v1525_v33, %v254_v32 }
  0xe6   :  { %602 = vrot.lane.b32.xlu1 %v561_v3, %s1358_s0  ;;  %v431_v45 = vmax.f32 %v327_v41, %v418_v24  ;;  %v144_v41 = vmul.f32 %v1520_v31, %v1556_v63 }
  0xe7   :  { %1212 = vmatpush3.bf16.msra.mxu0 %v1211_v42  ;;  %v315_v55 = vadd.f32 %v302_v50, %v289_v0  ;;  %v419_v5 = vadd.f32 %v406_v59, %v393_v28 }
  0xe9   :  { %v458_v18 = vpop.permute.xlu1 %457 }
  0xea   :  { %v496_v43 = vmul.f32 %v1520_v31, %v458_v18  ;;  %604 = vrot.lane.b32.xlu1 %v562_v2, %s1358_s0  ;;  %v142_v2 = vmul.f32 %v1520_v31, %v96_v19 }
  0xec   :  { %v522_v46 = vadd.f32 %v509_v21, %v496_v43  ;;  %v224_v57 = vadd.f32 %v211_v53, %v142_v2 }
  0xee   :  { %v535_v48 = vmax.f32 %v431_v45, %v522_v46  ;;  %v101_v49 = vpop.permute.xlu1 %100  ;;  %608 = vrot.lane.b32.xlu1 %v564_v8, %s1358_s0  ;;  %v328_v61 = vmax.f32 %v224_v57, %v315_v55  ;;  %v184_v46 = vpop.permute.xlu0 %183 }
  0xef   :  { %v143_v8 = vmul.f32 %v1520_v31, %v101_v49  ;;  %v303_v9 = vmul.f32 %v1525_v33, %v101_v49  ;;  %v214_v57 = vmul.f32 %v1525_v33, %v184_v46 }
  0xf0   :  { %v552_v58 = vadd.f32 %v1542_v52, %v535_v48  ;;  %v432_v10 = vmax.f32 %v328_v61, %v419_v5 }
  0xf1   :  { %v316_v22 = vadd.f32 %v303_v9, %v290_v7 }
  0xf2   :  { %v565_v54 = vmax.f32 %v552_v58, 0.0  ;;  %v1678_v53 = vpop.permute.xlu0 %195 }
  0xf3   :  { %v176_v56 = vpop.permute.xlu1 %175 }
  0xf4   :  { %579 = vst.msk [vmem:[#allocation2 + $0x20] sm:$0xff] %vm574_vm0, %v565_v54  ;;  %610 = vrot.lane.b32.xlu0 %v565_v54, %s1358_s0  ;;  %v212_v62 = vmul.f32 %v1525_v33, %v176_v56 }
  0xf6   :  { %v225_v26 = vadd.f32 %v212_v62, %v143_v8  ;;  %v370_v61 = vpop.permute.xlu0 %369 }
  0xf7   :  { %v396_v8 = vmul.f32 %v1520_v31, %v370_v61 }
  0xf8   :  { %v462_v3 = vpop.permute.xlu1 %461  ;;  %v329_v27 = vmax.f32 %v225_v26, %v316_v22 }
  0xf9   :  { %v497_v14 = vmul.f32 %v1520_v31, %v462_v3 }
  0xfb   :  { %v523_v12 = vadd.f32 %v510_v60, %v497_v14 }
  0xfd   :  { %v536_v19 = vmax.f32 %v432_v10, %v523_v12  ;;  %v362_v1 = vpop.permute.xlu1 %361  ;;  %v513_v10 = vmul.f32 %v1525_v33, %v370_v61 }
  0xfe   :  { %v394_v11 = vmul.f32 %v1520_v31, %v362_v1  ;;  %v511_v16 = vmul.f32 %v1525_v33, %v362_v1 }
  0xff   :  { %v553_v25 = vadd.f32 %v1542_v52, %v536_v19 }
 0x100   :  { %v420_v29 = vadd.f32 %v407_v6, %v394_v11  ;;  %v524_v35 = vadd.f32 %v511_v16, %v498_v20  ;;  %v293_v16 = vmul.f32 %v1520_v31, %v1531_v39 }
 0x101   :  { %v566_v32 = vmax.f32 %v553_v25, 0.0 }
 0x102   :  { %v433_v34 = vmax.f32 %v329_v27, %v420_v29  ;;  %v180_v36 = vpop.permute.xlu1 %179  ;;  %v410_v27 = vmul.f32 %v1525_v33, %v1531_v39 }
 0x103   :  { %580 = vst.msk [vmem:[#allocation2 + $0x28] sm:$0xff] %vm574_vm0, %v566_v32  ;;  %612 = vrot.lane.b32.xlu1 %v566_v32, %s1358_s0  ;;  %v213_v18 = vmul.f32 %v1525_v33, %v180_v36 }
 0x104   :  { %v537_v30 = vmax.f32 %v433_v34, %v524_v35  ;;  %v501_v34 = vmul.f32 %v1520_v31, %v1625_v51 }
 0x105   :  { %v226_v47 = vadd.f32 %v213_v18, %v144_v41 }
 0x106   :  { %v554_v23 = vadd.f32 %v1542_v52, %v537_v30 }
 0x107   :  { %v262_v4 = vpop.permute.xlu1 %261 }
 0x108   :  { %v567_v37 = vmax.f32 %v554_v23, 0.0  ;;  %v291_v40 = vmul.f32 %v1520_v31, %v262_v4  ;;  %v408_v45 = vmul.f32 %v1525_v33, %v262_v4  ;;  %v382_v4 = vpop.permute.xlu0 %381 }
 0x10a   :  { %581 = vst.msk [vmem:[#allocation2 + $0x30] sm:$0xff] %vm574_vm0, %v567_v37  ;;  %614 = vrot.lane.b32.xlu0 %v567_v37, %s1358_s0  ;;  %v317_v43 = vadd.f32 %v304_v38, %v291_v40 }
 0x10c   :  { %v366_v17 = vpop.permute.xlu1 %365  ;;  %v330_v0 = vmax.f32 %v226_v47, %v317_v43  ;;  %v282_v51 = vpop.permute.xlu0 %281 }
 0x10d   :  { %v395_v42 = vmul.f32 %v1520_v31, %v366_v17  ;;  %v512_v58 = vmul.f32 %v1525_v33, %v366_v17 }
 0x10f   :  { %v421_v48 = vadd.f32 %v408_v45, %v395_v42 }
 0x110   :  { %v490_v43 = vpop.permute.xlu0 %489 }
 0x111   :  { %v111_v24 = vpop.permute.xlu1 %110  ;;  %v434_v50 = vmax.f32 %v330_v0, %v421_v48 }
 0x112   :  { %v145_v59 = vmul.f32 %v1520_v31, %v111_v24  ;;  %v305_v60 = vmul.f32 %v1525_v33, %v111_v24 }
 0x114   :  { %v227_v14 = vadd.f32 %v214_v57, %v145_v59 }
 0x116   :  { %v266_v21 = vpop.permute.xlu1 %265 }
 0x117   :  { %v292_v56 = vmul.f32 %v1520_v31, %v266_v21  ;;  %v409_v7 = vmul.f32 %v1525_v33, %v266_v21 }
 0x119   :  { %v318_v3 = vadd.f32 %v305_v60, %v292_v56  ;;  %v422_v26 = vadd.f32 %v409_v7, %v396_v8 }
 0x11b   :  { %v470_v49 = vpop.permute.xlu1 %469  ;;  %v331_v9 = vmax.f32 %v227_v14, %v318_v3 }
 0x11c   :  { %v499_v2 = vmul.f32 %v1520_v31, %v470_v49  ;;  %v307_v49 = vmul.f32 %v1525_v33, %v1568_v15 }
 0x11d   :  { %v435_v22 = vmax.f32 %v331_v9, %v422_v26  ;;  %v399_v26 = vmul.f32 %v1520_v31, %v382_v4 }
 0x11e   :  { %v525_v63 = vadd.f32 %v512_v58, %v499_v2 }
 0x120   :  { %v538_v54 = vmax.f32 %v434_v50, %v525_v63  ;;  %v116_v55 = vpop.permute.xlu1 %115  ;;  %v147_v50 = vmul.f32 %v1520_v31, %v1568_v15  ;;  %v217_v15 = vmul.f32 %v1525_v33, %v1678_v53 }
 0x121   :  { %v146_v1 = vmul.f32 %v1520_v31, %v116_v55  ;;  %v306_v20 = vmul.f32 %v1525_v33, %v116_v55 }
 0x122   :  { %v555_v28 = vadd.f32 %v1542_v52, %v538_v54 }
 0x123   :  { %v319_v35 = vadd.f32 %v306_v20, %v293_v16 }
 0x124   :  { %v568_v62 = vmax.f32 %v555_v28, 0.0 }
 0x125   :  { %v188_v5 = vpop.permute.xlu1 %187 }
 0x126   :  { %582 = vst.msk [vmem:[#allocation2 + $0x38] sm:$0xff] %vm574_vm0, %v568_v62  ;;  %616 = vrot.lane.b32.xlu1 %v568_v62, %s1358_s0  ;;  %v215_v12 = vmul.f32 %v1525_v33, %v188_v5 }
 0x128   :  { %v228_v25 = vadd.f32 %v215_v12, %v146_v1 }
 0x12a   :  { %v474_v6 = vpop.permute.xlu1 %473  ;;  %v332_v37 = vmax.f32 %v228_v25, %v319_v35 }
 0x12b   :  { %v500_v19 = vmul.f32 %v1520_v31, %v474_v6 }
 0x12d   :  { %v526_v11 = vadd.f32 %v513_v10, %v500_v19 }
 0x12f   :  { %v539_v29 = vmax.f32 %v435_v22, %v526_v11  ;;  %v374_v32 = vpop.permute.xlu1 %373  ;;  %v516_v11 = vmul.f32 %v1525_v33, %v382_v4 }
 0x130   :  { %v397_v36 = vmul.f32 %v1520_v31, %v374_v32  ;;  %v514_v30 = vmul.f32 %v1525_v33, %v374_v32 }
 0x131   :  { %v556_v23 = vadd.f32 %v1542_v52, %v539_v29 }
 0x132   :  { %v423_v17 = vadd.f32 %v410_v27, %v397_v36  ;;  %v527_v40 = vadd.f32 %v514_v30, %v501_v34  ;;  %v296_v27 = vmul.f32 %v1520_v31, %v282_v51  ;;  %v413_v30 = vmul.f32 %v1525_v33, %v282_v51 }
 0x133   :  { %v569_v24 = vmax.f32 %v556_v23, 0.0 }
 0x134   :  { %v436_v38 = vmax.f32 %v332_v37, %v423_v17  ;;  %v192_v41 = vpop.permute.xlu1 %191  ;;  %v504_v17 = vmul.f32 %v1520_v31, %v490_v43 }
 0x135   :  { %583 = vst.msk [vmem:[#allocation2 + $0x40] sm:$0xff] %vm574_vm0, %v569_v24  ;;  %618 = vrot.lane.b32.xlu0 %v569_v24, %s1358_s0  ;;  %v216_v0 = vmul.f32 %v1525_v33, %v192_v41 }
 0x136   :  { %v540_v39 = vmax.f32 %v436_v38, %v527_v40 }
 0x137   :  { %v229_v55 = vadd.f32 %v216_v0, %v147_v50 }
 0x138   :  { %v557_v18 = vadd.f32 %v1542_v52, %v540_v39 }
 0x139   :  { %v274_v42 = vpop.permute.xlu1 %273 }
 0x13a   :  { %v570_v21 = vmax.f32 %v557_v18, 0.0  ;;  %v294_v48 = vmul.f32 %v1520_v31, %v274_v42  ;;  %v411_v54 = vmul.f32 %v1525_v33, %v274_v42 }
 0x13c   :  { %584 = vst.msk [vmem:[#allocation2 + $0x48] sm:$0xff] %vm574_vm0, %v570_v21  ;;  %620 = vrot.lane.b32.xlu1 %v570_v21, %s1358_s0  ;;  %v320_v63 = vadd.f32 %v307_v49, %v294_v48 }
 0x13e   :  { %v378_v45 = vpop.permute.xlu1 %377  ;;  %v333_v57 = vmax.f32 %v229_v55, %v320_v63 }
 0x13f   :  { %v398_v58 = vmul.f32 %v1520_v31, %v378_v45  ;;  %v515_v59 = vmul.f32 %v1525_v33, %v378_v45 }
 0x141   :  { %v424_v56 = vadd.f32 %v411_v54, %v398_v58 }
 0x143   :  { %v126_v46 = vpop.permute.xlu1 %125  ;;  %v607_v47 = vpop.permute.xlu0 %606  ;;  %v437_v61 = vmax.f32 %v333_v57, %v424_v56 }
 0x144   :  { %644 = vst.msk [vmem:[#allocation2 + $0x11] sm:$0xff] %vm641_vm2, %v607_v47  ;;  %v148_v8 = vmul.f32 %v1520_v31, %v126_v46  ;;  %v308_v9 = vmul.f32 %v1525_v33, %v126_v46 }
 0x146   :  { %v230_v19 = vadd.f32 %v217_v15, %v148_v8  ;;  %v26_v15 = vld [vmem:[#allocation7] sm:$0xff]  ;;  %v27_v8 = vld [vmem:[#allocation7 + $0x8] sm:$0xff] }
 0x148   :  { %v278_v2 = vpop.permute.xlu1 %277 }
 0x149   :  { %v295_v14 = vmul.f32 %v1520_v31, %v278_v2  ;;  %v412_v1 = vmul.f32 %v1525_v33, %v278_v2 }
 0x14b   :  { %v321_v12 = vadd.f32 %v308_v9, %v295_v14  ;;  %v425_v16 = vadd.f32 %v412_v1, %v399_v26  ;;  %v658_v0 = vld [vmem:[#allocation2 + $0x11] sm:$0xff]  ;;  %v1214_v9 = vpack.c.bf16 %v27_v8, %v26_v15  ;;  %v30_v1 = vld [vmem:[#allocation7 + $0x20] sm:$0xff] }
 0x14d   :  { %v482_v28 = vpop.permute.xlu1 %481  ;;  %v334_v20 = vmax.f32 %v230_v19, %v321_v12  ;;  %1215 = vmatpush3.bf16.msra.mxu1 %v1214_v9  ;;  %v29_v12 = vld [vmem:[#allocation7 + $0x18] sm:$0xff] }
 0x14e   :  { %v502_v60 = vmul.f32 %v1520_v31, %v482_v28  ;;  %1216 = vmatprep.subr.bf16.mxu1 %v1359_v13 }
 0x14f   :  { %v438_v34 = vmax.f32 %v334_v20, %v425_v16  ;;  %v31_v20 = vld [vmem:[#allocation7 + $0x28] sm:$0xff]  ;;  %v32_v16 = vld [vmem:[#allocation7 + $0x30] sm:$0xff] }
 0x150   :  { %v528_v62 = vadd.f32 %v515_v59, %v502_v60 }
 0x152   :  { %v541_v3 = vmax.f32 %v437_v61, %v528_v62  ;;  %v131_v5 = vpop.permute.xlu1 %130 }
 0x153   :  { %v149_v29 = vmul.f32 %v1520_v31, %v131_v5  ;;  %v309_v32 = vmul.f32 %v1525_v33, %v131_v5 }
 0x154   :  { %v558_v7 = vadd.f32 %v1542_v52, %v541_v3 }
 0x155   :  { %v322_v24 = vadd.f32 %v309_v32, %v296_v27 }
 0x156   :  { %v571_v10 = vmax.f32 %v558_v7, 0.0 }
 0x157   :  { %v200_v6 = vpop.permute.xlu1 %199 }
 0x158   :  { %585 = vst.msk [vmem:[#allocation2 + $0x50] sm:$0xff] %vm574_vm0, %v571_v10  ;;  %622 = vrot.lane.b32.xlu0 %v571_v10, %s1358_s0  ;;  %v218_v22 = vmul.f32 %v1525_v33, %v200_v6  ;;  %v28_v10 = vld [vmem:[#allocation7 + $0x10] sm:$0xff]  ;;  %v1793_v6 = vld [vmem:[#allocation7 + $0xc1] ss:$0 sm:$0xff] }
 0x159   :  { %v1217_v26 = vpack.c.bf16 %v29_v12, %v28_v10 }
 0x15a   :  { %v231_v36 = vadd.f32 %v218_v22, %v149_v29 }
 0x15b   :  { %1218 = vmatpush3.bf16.msra.mxu1 %v1217_v26 }
 0x15c   :  { %v486_v53 = vpop.permute.xlu1 %485  ;;  %v335_v41 = vmax.f32 %v231_v36, %v322_v24  ;;  %1219 = vmatprep.subr.bf16.mxu1 %v1359_v13  ;;  %v35_v24 = vld [vmem:[#allocation7 + $0x48] sm:$0xff] }
 0x15d   :  { %v503_v25 = vmul.f32 %v1520_v31, %v486_v53 }
 0x15f   :  { %v529_v35 = vadd.f32 %v516_v11, %v503_v25  ;;  %v1220_v11 = vpack.c.bf16 %v31_v20, %v30_v1  ;;  %v33_v25 = vld [vmem:[#allocation7 + $0x38] sm:$0xff] }
 0x160   :  { %v1223_v32 = vpack.c.bf16 %v33_v25, %v32_v16 }
 0x161   :  { %v542_v23 = vmax.f32 %v438_v34, %v529_v35  ;;  %v386_v37 = vpop.permute.xlu1 %385  ;;  %1221 = vmatpush3.bf16.msra.mxu1 %v1220_v11 }
 0x162   :  { %v400_v4 = vmul.f32 %v1520_v31, %v386_v37  ;;  %v517_v38 = vmul.f32 %v1525_v33, %v386_v37  ;;  %1222 = vmatprep.subr.bf16.mxu1 %v1359_v13 }
 0x163   :  { %v559_v40 = vadd.f32 %v1542_v52, %v542_v23 }
 0x164   :  { %v426_v39 = vadd.f32 %v413_v30, %v400_v4  ;;  %v530_v45 = vadd.f32 %v517_v38, %v504_v17  ;;  %v34_v17 = vld [vmem:[#allocation7 + $0x40] sm:$0xff]  ;;  %v36_v38 = vld [vmem:[#allocation7 + $0x50] sm:$0xff] }
 0x165   :  { %v603_v18 = vpop.permute.xlu1 %602  ;;  %v572_v42 = vmax.f32 %v559_v40, 0.0  ;;  %1224 = vmatpush3.bf16.msra.mxu1 %v1223_v32  ;;  %v1226_v4 = vpack.c.bf16 %v35_v24, %v34_v17  ;;  %v37_v40 = vld [vmem:[#allocation7 + $0x58] sm:$0xff] }
 0x166   :  { %v439_v21 = vmax.f32 %v335_v41, %v426_v39  ;;  %642 = vst.msk [vmem:[#allocation2 + $0x1] sm:$0xff] %vm641_vm2, %v603_v18  ;;  %v611_v51 = vpop.permute.xlu0 %610  ;;  %1225 = vmatprep.subr.bf16.mxu1 %v1359_v13  ;;  %v1229_v18 = vpack.c.bf16 %v37_v40, %v36_v38 }
 0x167   :  { %646 = vst.msk [vmem:[#allocation2 + $0x21] sm:$0xff] %vm641_vm2, %v611_v51  ;;  %624 = vrot.lane.b32.xlu1 %v572_v42, %s1358_s0 }
 0x168   :  { %586 = vst.msk [vmem:[#allocation2 + $0x58] sm:$0xff] %vm574_vm0, %v572_v42  ;;  %v543_v31 = vmax.f32 %v439_v21, %v530_v45 }
 0x169   :  { %v605_v43 = vpop.permute.xlu1 %604  ;;  %1227 = vmatpush3.bf16.msra.mxu1 %v1226_v4 }
 0x16a   :  { %643 = vst.msk [vmem:[#allocation2 + $0x9] sm:$0xff] %vm641_vm2, %v605_v43  ;;  %v560_v33 = vadd.f32 %v1542_v52, %v543_v31  ;;  %1228 = vmatprep.subr.bf16.mxu1 %v1359_v13 }
 0x16c   :  { %v573_v46 = vmax.f32 %v560_v33, 0.0  ;;  %v38_v33 = vld [vmem:[#allocation7 + $0x60] sm:$0xff] }
 0x16d   :  { %v609_v47 = vpop.permute.xlu1 %608  ;;  %v656_v48 = vld [vmem:[#allocation2 + $0x1] sm:$0xff]  ;;  %1230 = vmatpush3.bf16.msra.mxu1 %v1229_v18 }
 0x16e   :  { %645 = vst.msk [vmem:[#allocation2 + $0x19] sm:$0xff] %vm641_vm2, %v609_v47  ;;  %626 = vrot.lane.b32.xlu0 %v573_v46, %s1358_s0  ;;  %1122 = vmatmul.mubr.msk.f32.vlgmr.msra.gmra.mrb[0].mxu0 %vm673_vm4, %v656_v48  ;;  %v660_v50 = vld [vmem:[#allocation2 + $0x21] sm:$0xff]  ;;  %v40_v48 = vld [vmem:[#allocation7 + $0x70] sm:$0xff] }
 0x16f   :  { %588 = vst.msk [vmem:[#allocation2 + $0x60] sm:$0x3] %vm587_vm3, %v573_v46  ;;  %1124 = vmatprep.mubr.msk.f32.mxu0 %vm1360_vm1, %v1361_v44  ;;  %1231 = vmatprep.subr.bf16.mxu1 %v1359_v13  ;;  %v39_v46 = vld [vmem:[#allocation7 + $0x68] sm:$0xff] }
 0x170   :  { %v1232_v47 = vpack.c.bf16 %v39_v46, %v38_v33 }
 0x171   :  { %v657_v49 = vld [vmem:[#allocation2 + $0x9] sm:$0xff] }
 0x172   :  { %1125 = vmatmul.mubr.msk.f32.gmra.mrb[2].mxu0 %vm673_vm4, %v657_v49  ;;  %v41_v49 = vld [vmem:[#allocation7 + $0x78] sm:$0xff]  ;;  %1233 = vmatpush3.bf16.msra.mxu1 %v1232_v47 }
 0x173   :  { %1127 = vmatprep.mubr.msk.f32.mxu0 %vm1360_vm1, %v1361_v44  ;;  %1234 = vmatprep.subr.bf16.mxu1 %v1359_v13 }
 0x175   :  { %v613_v52 = vpop.permute.xlu1 %612  ;;  %v659_v58 = vld [vmem:[#allocation2 + $0x19] sm:$0xff] }
 0x176   :  { %647 = vst.msk [vmem:[#allocation2 + $0x29] sm:$0xff] %vm641_vm2, %v613_v52  ;;  %1128 = vmatmul.mubr.msk.f32.gmra.mrb[4].mxu0 %vm673_vm4, %v658_v0 }
 0x177   :  { %1130 = vmatprep.mubr.msk.f32.mxu0 %vm1360_vm1, %v1361_v44 }
 0x17a   :  { %1131 = vmatmul.mubr.msk.f32.gmra.mrb[6].mxu0 %vm673_vm4, %v659_v58  ;;  %v1235_v58 = vpack.c.bf16 %v41_v49, %v40_v48  ;;  %v1064_v48 = vld [vmem:[#allocation7 + $0xc0] ss:$0 sm:$0xff] }
 0x17b   :  { %1133 = vmatprep.mubr.msk.f32.mxu0 %vm1360_vm1, %v1361_v44 }
 0x17c   :  { %v615_v2 = vpop.permute.xlu0 %614  ;;  %1236 = vmatpush3.bf16.msra.mxu1 %v1235_v58 }
 0x17d   :  { %648 = vst.msk [vmem:[#allocation2 + $0x31] sm:$0xff] %vm641_vm2, %v615_v2  ;;  %v661_v63 = vld [vmem:[#allocation2 + $0x29] sm:$0xff] }
 0x17e   :  { %1134 = vmatmul.mubr.msk.f32.gmra.mrb[8].mxu0 %vm673_vm4, %v660_v50 }
 0x17f   :  { %1136 = vmatprep.mubr.msk.f32.mxu0 %vm1360_vm1, %v1361_v44 }
 0x182   :  { %1137 = vmatmul.mubr.msk.f32.gmra.mrb[10].mxu0 %vm673_vm4, %v661_v63 }
 0x183   :  { %1139 = vmatprep.mubr.msk.f32.mxu0 %vm1360_vm1, %v1361_v44 }
 0x184   :  { %v662_v54 = vld [vmem:[#allocation2 + $0x31] sm:$0xff] }
 0x186   :  { %1140 = vmatmul.mubr.msk.f32.gmra.mrb[12].mxu0 %vm673_vm4, %v662_v54 }
 0x187   :  { %1142 = vmatprep.mubr.msk.f32.mxu0 %vm1360_vm1, %v1361_v44 }
 0x198   :  { %v617_v55 = vpop.permute.xlu1 %616 }
 0x199   :  { %649 = vst.msk [vmem:[#allocation2 + $0x39] sm:$0xff] %vm641_vm2, %v617_v55 }
 0x1a0   :  { %v663_v56 = vld [vmem:[#allocation2 + $0x39] sm:$0xff] }
 0x1a1   :  { %1143 = vmatmul.mubr.msk.f32.gmra.mrb[14].mxu0 %vm673_vm4, %v663_v56 }
 0x1a2   :  { %1145 = vmatprep.mubr.msk.f32.mxu0 %vm1360_vm1, %v1361_v44 }
 0x1a7   :  { %v619_v28 = vpop.permute.xlu0 %618 }
 0x1a8   :  { %650 = vst.msk [vmem:[#allocation2 + $0x41] sm:$0xff] %vm641_vm2, %v619_v28 }
 0x1ae   :  { %v621_v57 = vpop.permute.xlu1 %620 }
 0x1af   :  { %651 = vst.msk [vmem:[#allocation2 + $0x49] sm:$0xff] %vm641_vm2, %v621_v57  ;;  %v664_v59 = vld [vmem:[#allocation2 + $0x41] sm:$0xff] }
 0x1b0   :  { %1146 = vmatmul.mubr.msk.f32.gmra.mrb[16].mxu0 %vm673_vm4, %v664_v59 }
 0x1b1   :  { %1148 = vmatprep.mubr.msk.f32.mxu0 %vm1360_vm1, %v1361_v44 }
 0x1b6   :  { %v665_v60 = vld [vmem:[#allocation2 + $0x49] sm:$0xff] }
 0x1b7   :  { %1149 = vmatmul.mubr.msk.f32.gmra.mrb[18].mxu0 %vm673_vm4, %v665_v60 }
 0x1b8   :  { %1151 = vmatprep.mubr.msk.f32.mxu0 %vm1360_vm1, %v1361_v44 }
 0x1ca   :  { %v623_v61 = vpop.permute.xlu0 %622 }
 0x1cb   :  { %652 = vst.msk [vmem:[#allocation2 + $0x51] sm:$0xff] %vm641_vm2, %v623_v61 }
 0x1d2   :  { %v666_v62 = vld [vmem:[#allocation2 + $0x51] sm:$0xff] }
 0x1d3   :  { %1152 = vmatmul.mubr.msk.f32.gmra.mrb[20].mxu0 %vm673_vm4, %v666_v62 }
 0x1d4   :  { %1154 = vmatprep.mubr.msk.f32.mxu0 %vm1360_vm1, %v1361_v44 }
 0x1d9   :  { %v625_v3 = vpop.permute.xlu1 %624 }
 0x1da   :  { %653 = vst.msk [vmem:[#allocation2 + $0x59] sm:$0xff] %vm641_vm2, %v625_v3 }
 0x1e0   :  { %v627_v5 = vpop.permute.xlu0 %626 }
 0x1e1   :  { %655 = vst.msk [vmem:[#allocation2 + $0x61] sm:$0x3] %vm654_vm5, %v627_v5  ;;  %v667_v14 = vld [vmem:[#allocation2 + $0x59] sm:$0xff] }
 0x1e2   :  { %1155 = vmatmul.mubr.msk.f32.gmra.mrb[22].mxu0 %vm673_vm4, %v667_v14 }
 0x1e3   :  { %1157 = vmatprep.mubr.msk.f32.mxu0 %vm1360_vm1, %v1361_v44 }
 0x1e8   :  { %v668_v7 = vld [vmem:[#allocation2 + $0x61] sm:$0x1] }
 0x1e9   :  { %1158 = vmatmul.mubr.msk.f32.gmra.mrb[24].mxu0 %vm673_vm4, %v668_v7 }
 0x241   :  { %v779_v19 = vpop.f32.mrb[0].mxu0 }
 0x242   :  { %v780_v22 = vadd.f32 %v1793_v6, %v779_v19  ;;  %v1123_v53 = vpop.f32.mrb[1].mxu0 }
 0x244   :  { %v843_v27 = vmax.f32 %v780_v22, 0.0 }
 0x245   :  { %v784_v29 = vpop.f32.mrb[2].mxu0 }
 0x246   :  { %856 = vst.msk [vmem:[#allocation3] sm:$0xff] %vm673_vm4, %v843_v27  ;;  %v785_v34 = vadd.f32 %v1793_v6, %v784_v29  ;;  %v1126_v35 = vpop.f32.mrb[3].mxu0 }
 0x248   :  { %v844_v36 = vmax.f32 %v785_v34, 0.0 }
 0x249   :  { %v789_v30 = vpop.f32.mrb[4].mxu0 }
 0x24a   :  { %857 = vst.msk [vmem:[#allocation3 + $0x8] sm:$0xff] %vm673_vm4, %v844_v36  ;;  %v790_v23 = vadd.f32 %v1793_v6, %v789_v30  ;;  %v1129_v37 = vpop.f32.mrb[5].mxu0 }
 0x24c   :  { %v845_v41 = vmax.f32 %v790_v23, 0.0 }
 0x24d   :  { %v794_v39 = vpop.f32.mrb[6].mxu0 }
 0x24e   :  { %858 = vst.msk [vmem:[#allocation3 + $0x10] sm:$0xff] %vm673_vm4, %v845_v41  ;;  %v795_v42 = vadd.f32 %v1793_v6, %v794_v39  ;;  %v1132_v21 = vpop.f32.mrb[7].mxu0 }
 0x250   :  { %v846_v45 = vmax.f32 %v795_v42, 0.0 }
 0x251   :  { %v799_v51 = vpop.f32.mrb[8].mxu0 }
 0x252   :  { %859 = vst.msk [vmem:[#allocation3 + $0x18] sm:$0xff] %vm673_vm4, %v846_v45  ;;  %v800_v31 = vadd.f32 %v1793_v6, %v799_v51  ;;  %v1135_v43 = vpop.f32.mrb[9].mxu0 }
 0x254   :  { %v847_v52 = vmax.f32 %v800_v31, 0.0 }
 0x255   :  { %v804_v0 = vpop.f32.mrb[10].mxu0 }
 0x256   :  { %860 = vst.msk [vmem:[#allocation3 + $0x20] sm:$0xff] %vm673_vm4, %v847_v52  ;;  %v805_v2 = vadd.f32 %v1793_v6, %v804_v0  ;;  %v1138_v50 = vpop.f32.mrb[11].mxu0 }
 0x258   :  { %v848_v63 = vmax.f32 %v805_v2, 0.0 }
 0x259   :  { %v809_v54 = vpop.f32.mrb[12].mxu0  ;;  %v871_v55 = vld [vmem:[#allocation3] ss:$4 sm:$0xff]  ;;  %v877_v56 = vld [vmem:[#allocation3 + $0x1] ss:$4 sm:$0xff] }
 0x25a   :  { %861 = vst.msk [vmem:[#allocation3 + $0x28] sm:$0xff] %vm673_vm4, %v848_v63  ;;  %v810_v28 = vadd.f32 %v1793_v6, %v809_v54  ;;  %v1141_v57 = vpop.f32.mrb[13].mxu0  ;;  %v882_v59 = vmax.f32 %v871_v55, %v877_v56  ;;  %v886_v60 = vld [vmem:[#allocation3 + $0x2] ss:$4 sm:$0xff]  ;;  %v895_v3 = vld [vmem:[#allocation3 + $0x3] ss:$4 sm:$0xff] }
 0x25c   :  { %v849_v61 = vmax.f32 %v810_v28, 0.0  ;;  %v891_v62 = vmax.f32 %v882_v59, %v886_v60 }
 0x25e   :  { %863 = vst.msk [vmem:[#allocation3 + $0x2f] sm:$0xfe] %vm862_vm6, %v849_v61  ;;  %v900_v5 = vmax.f32 %v891_v62, %v895_v3 }
 0x260   :  { %909 = vrot.lane.b32.xlu1 %v900_v5, %s1362_s20  ;;  %903 = vst.msk [vmem:[#allocation4] sm:$0xff] %vm673_vm4, %v900_v5 }
 0x274   :  { %v814_v13 = vpop.f32.mrb[14].mxu0 }
 0x275   :  { %v815_v14 = vadd.f32 %v1793_v6, %v814_v13  ;;  %v1144_v7 = vpop.f32.mrb[15].mxu0 }
 0x277   :  { %v850_v15 = vmax.f32 %v815_v14, 0.0 }
 0x279   :  { %864 = vst.msk [vmem:[#allocation3 + $0x37] sm:$0xff] %vm673_vm4, %v850_v15 }
 0x280   :  { %v873_v26 = vld [vmem:[#allocation3 + $0x20] ss:$4 sm:$0xff]  ;;  %v879_v19 = vld [vmem:[#allocation3 + $0x21] ss:$4 sm:$0xff]  ;;  %v888_v16 = vld [vmem:[#allocation3 + $0x22] ss:$4 sm:$0xff] }
 0x281   :  { %v883_v20 = vmax.f32 %v873_v26, %v879_v19 }
 0x283   :  { %v819_v8 = vpop.f32.mrb[16].mxu0  ;;  %v892_v25 = vmax.f32 %v883_v20, %v888_v16 }
 0x284   :  { %v820_v9 = vadd.f32 %v1793_v6, %v819_v8  ;;  %v1147_v10 = vpop.f32.mrb[17].mxu0 }
 0x286   :  { %v851_v12 = vmax.f32 %v820_v9, 0.0 }
 0x288   :  { %865 = vst.msk [vmem:[#allocation3 + $0x3f] sm:$0xff] %vm673_vm4, %v851_v12 }
 0x28a   :  { %v824_v1 = vpop.f32.mrb[18].mxu0 }
 0x28b   :  { %v825_v22 = vadd.f32 %v1793_v6, %v824_v1  ;;  %v1150_v53 = vpop.f32.mrb[19].mxu0 }
 0x28d   :  { %v852_v11 = vmax.f32 %v825_v22, 0.0 }
 0x28f   :  { %866 = vst.msk [vmem:[#allocation3 + $0x47] sm:$0xff] %vm673_vm4, %v852_v11  ;;  %v897_v27 = vld [vmem:[#allocation3 + $0x23] ss:$4 sm:$0xff] }
 0x290   :  { %v901_v29 = vmax.f32 %v892_v25, %v897_v27 }
 0x292   :  { %911 = vrot.lane.b32.xlu0 %v901_v29, %s1362_s20  ;;  %904 = vst.msk [vmem:[#allocation4 + $0x8] sm:$0xff] %vm673_vm4, %v901_v29 }
 0x2a6   :  { %v829_v32 = vpop.f32.mrb[20].mxu0 }
 0x2a7   :  { %v830_v34 = vadd.f32 %v1793_v6, %v829_v32  ;;  %v1153_v35 = vpop.f32.mrb[21].mxu0 }
 0x2a9   :  { %v853_v36 = vmax.f32 %v830_v34, 0.0 }
 0x2ab   :  { %867 = vst.msk [vmem:[#allocation3 + $0x4f] sm:$0xff] %vm673_vm4, %v853_v36 }
 0x2b5   :  { %v834_v30 = vpop.f32.mrb[22].mxu0 }
 0x2b6   :  { %v835_v23 = vadd.f32 %v1793_v6, %v834_v30  ;;  %v1156_v37 = vpop.f32.mrb[23].mxu0 }
 0x2b8   :  { %v854_v17 = vmax.f32 %v835_v23, 0.0 }
 0x2ba   :  { %868 = vst.msk [vmem:[#allocation3 + $0x57] sm:$0xff] %vm673_vm4, %v854_v17 }
 0x2bc   :  { %v839_v24 = vpop.f32.mrb[24].mxu0 }
 0x2bd   :  { %v840_v4 = vadd.f32 %v1793_v6, %v839_v24  ;;  %v1159_v38 = vpop.f32.mrb[25].mxu0 }
 0x2bf   :  { %v855_v40 = vmax.f32 %v840_v4, 0.0 }
 0x2c1   :  { %870 = vst.msk [vmem:[#allocation3 + $0x5f] sm:$0x1] %vm869_vm7, %v855_v40  ;;  %v875_v41 = vld [vmem:[#allocation3 + $0x40] ss:$4 sm:$0xff]  ;;  %v881_v39 = vld [vmem:[#allocation3 + $0x41] ss:$4 sm:$0xff] }
 0x2c2   :  { %v884_v18 = vmax.f32 %v875_v41, %v881_v39  ;;  %v890_v42 = vld [vmem:[#allocation3 + $0x42] ss:$4 sm:$0xff] }
 0x2c4   :  { %v893_v21 = vmax.f32 %v884_v18, %v890_v42 }
 0x2c8   :  { %v899_v45 = vld [vmem:[#allocation3 + $0x43] ss:$4 sm:$0xff] }
 0x2c9   :  { %v902_v51 = vmax.f32 %v893_v21, %v899_v45 }
 0x2cb   :  { %913 = vrot.lane.b32.xlu1 %v902_v51, %s1362_s20  ;;  %905 = vst.msk [vmem:[#allocation4 + $0x10] sm:$0xff] %vm673_vm4, %v902_v51 }
 0x2d2   :  { %v910_v31 = vpop.permute.xlu1 %909 }
 0x2d3   :  { %919 = vst.msk [vmem:[#allocation4 + $0x1] sm:$0xff] %vm918_vm8, %v910_v31 }
 0x2da   :  { %v922_v43 = vld [vmem:[#allocation4 + $0x1] sm:$0xff] }
 0x2db   :  { %1193 = vmatmul.mubr.f32.vlgmr.msra.gmra.mrb[0].mxu1 %v922_v43 }
 0x2dc   :  { %1195 = vmatprep.mubr.msk.f32.mxu1 %vm1360_vm1, %v1361_v44 }
 0x304   :  { %v912_v6 = vpop.permute.xlu0 %911 }
 0x305   :  { %920 = vst.msk [vmem:[#allocation4 + $0x9] sm:$0xff] %vm918_vm8, %v912_v6 }
 0x30c   :  { %v923_v33 = vld [vmem:[#allocation4 + $0x9] sm:$0xff] }
 0x30d   :  { %1196 = vmatmul.mubr.f32.gmra.mrb[2].mxu1 %v923_v33 }
 0x30e   :  { %1198 = vmatprep.mubr.msk.f32.mxu1 %vm1360_vm1, %v1361_v44 }
 0x33d   :  { %v914_v46 = vpop.permute.xlu1 %913 }
 0x33e   :  { %921 = vst.msk [vmem:[#allocation4 + $0x11] sm:$0xff] %vm918_vm8, %v914_v46 }
 0x345   :  { %v924_v47 = vld [vmem:[#allocation4 + $0x11] sm:$0x7f] }
 0x346   :  { %1199 = vmatmul.mubr.f32.gmra.mrb[4].mxu1 %v924_v47 }
 0x3ae   :  { %v995_v49 = vpop.f32.mrb[0].mxu1 }
 0x3af   :  { %v996_v52 = vadd.f32 %v1064_v48, %v995_v49  ;;  %v1194_v0 = vpop.f32.mrb[1].mxu1 }
 0x3b1   :  { %v1009_v58 = vmax.f32 %v996_v52, 0.0 }
 0x3b3   :  { %1012 = vst [vmem:[#allocation5] sm:$0xff] %v1009_v58 }
 0x3e0   :  { %v1000_v2 = vpop.f32.mrb[2].mxu1 }
 0x3e1   :  { %v1001_v50 = vadd.f32 %v1064_v48, %v1000_v2  ;;  %v1197_v63 = vpop.f32.mrb[3].mxu1 }
 0x3e3   :  { %v1010_v54 = vmax.f32 %v1001_v50, 0.0 }
 0x3e5   :  { %1013 = vst [vmem:[#allocation5 + $0x4] sm:$0xf0] %v1010_v54 }
 0x419   :  { %v1005_v55 = vpop.f32.mrb[4].mxu1 }
 0x41a   :  { %v1006_v56 = vadd.f32 %v1064_v48, %v1005_v55  ;;  %v1200_v28 = vpop.f32.mrb[5].mxu1 }
 0x41c   :  { %v1011_v57 = vmax.f32 %v1006_v56, 0.0 }
 0x41e   :  { %1014 = vst [vmem:[#allocation5 + $0xc] sm:$0xf] %v1011_v57 }
 0x425   :  { %v1015_v44 = vld [vmem:[#allocation5] ss:$4 sm:$0xf]  ;;  %v1017_v59 = vld [vmem:[#allocation5 + $0x1] ss:$4 sm:$0xf] }
 0x426   :  { %v1018_v60 = vmax.f32 %v1015_v44, %v1017_v59  ;;  %v1020_v61 = vld [vmem:[#allocation5 + $0x2] ss:$4 sm:$0xf]  ;;  %v1023_v3 = vld [vmem:[#allocation5 + $0x3] ss:$4 sm:$0xf] }
 0x428   :  { %v1021_v62 = vmax.f32 %v1018_v60, %v1020_v61 }
 0x42a   :  { %v1024_v5 = vmax.f32 %v1021_v62, %v1023_v3 }
 0x42c   :  { %1025 = vst [vmem:[#allocation6] sm:$0xf] %v1024_v5 }
 0x433   :  { %v1026_v13 = vld [vmem:[#allocation6] ss:$2 sm:$0x3]  ;;  %v1028_v14 = vld [vmem:[#allocation6 + $0x1] ss:$2 sm:$0x3] }
 0x434   :  { %v1029_v7 = vadd.f32 %v1028_v14, %v1026_v13 }
 0x436   :  { %v1030_v15 = vmul.f32 0.5, %v1029_v7 }
 0x438   :  { %1031 = vst [vmem:[#allocation10] sm:$0x3] %v1030_v15 }
 0x439   :  { %1335 = shalt.err (!%p1332_p12)
}
 0x43a   :  { %s1336_s26 = scalar_lea.hbm %s1849_s2, 32 }
 0x43b   :  { %p1337_p13 = scmp.ne.s32.totalorder %s1849_s2, %s1336_s26  ;;  %p1340_p0 = scmp.lt.u32.totalorder %s1336_s26, %s1849_s2 }
 0x43d   :  { %p1342_p1 = pnand %p1340_p0, %p1337_p13 }
 0x43f   :  { %1345 = shalt.err (!%p1342_p1)
}
 0x440   :  { %1041 = dma.vmem_to_hbm [thread:$0]  %s1039_s22, 32, %s1849_s2, [#allocation9]  }
 0x441   :  { %1348 = dma.done.wait [#allocation9], 32  }
 0x442   :  { %1349 = vsyncadd [#allocation9], 4294967264 }
 0x443   :  { %1045 = vsyncpa [#allocation8], 1 }
 0x444   :  { %1046 = vsyncpa [#allocation9], 1 }

</bundles_post_ra>
